<compile_context>
chip_gen: v7x
topology: tpu7x:2x2x1
jax: 0.10.0
libtpu: 0.0.40
codegen_flags: <defaults>
</compile_context>

<pallas_src>
import numpy as np
import jax
import jax.numpy as jnp
from jax.experimental import pallas as pl
from jax.experimental.pallas import tpu as pltpu

# ---- synthetic "config" (matches the hyperparameters the module needs) ----
KERNEL_SIZES = (2, 3)   # config.kernel_sizes
MEM_DIM = 8             # config.mem_dim
COV_DIM = 16            # config.cov_dim
SEQ_LEN = 12            # sequence length of t_q / t_a
BATCH = 2

_NEG = -1e30            # "minus infinity" for masking padded time steps


def _round_up(x, m):
    return (x + m - 1) // m * m


def _make_kernel(batch, t_pad, n_c):
    def kernel(x_ref, w_ref, bias_ref, lim_ref, fcq_ref, fca_ref, fcb_ref,
               out_ref):
        # (1) One fused MXU matmul: all batches, q+a sides, all taps and all
        #     conv widths at once (im2col rows @ stacked/zero-padded weights).
        #     Operands may be bf16; accumulation is f32.
        y = jnp.dot(x_ref[...], w_ref[...],
                    preferred_element_type=jnp.float32)           # (2B*T, n*C)
        y = y.reshape(2 * batch, t_pad, n_c)                      # (2B, T, n*C)

        # (2) Time-validity mask built in-kernel (no DMA'd addend): window t of
        #     channel-group g is valid iff t < l_out[g].
        t_idx = jax.lax.broadcasted_iota(jnp.int32, (t_pad, n_c), 0)
        mask = jnp.where(t_idx < lim_ref[...], 0.0, _NEG)         # (T, n*C) f32
        y = y + mask[None, :, :]

        # (3) max over time, then per-channel bias (commutes with max), ReLU.
        pooled = jnp.maximum(jnp.max(y, axis=1) + bias_ref[...], 0.0)  # (2B, n*C)

        # (4) FC tail on the VPU: elementwise multiply + single lane-sum
        #     reduction per row group (no MXU pushes, no (n*C,1) tail matmul).
        q = pooled[:batch]                                        # (B, n*C)
        a = pooled[batch:]                                        # (B, n*C)
        out_ref[...] = (jnp.sum(q * fcq_ref[...] + a * fca_ref[...],
                                axis=-1, keepdims=True)
                        + fcb_ref[...])                           # (B, 1)
    return kernel


def make_conv_module(conv_ws, conv_bs, fc_w, fc_b, compute_dtype=jnp.float32):
    """One-time (module-init) weight-only layout prep + a jitted forward.

    conv_ws[i]: (K_i, D, C) == torch conv.weight.permute(2, 1, 0)
    conv_bs[i]: (1, C); fc_w: (2*n*C, 1) == torch fc.weight.T; fc_b: (1, 1).
    `compute_dtype` controls the conv-bank matmul operand dtype (bf16 halves
    DMA bytes on the MXU-native path); everything else stays f32.
    """
    Ks = tuple(int(w.shape[0]) for w in conv_ws)
    D = int(conv_ws[0].shape[1])
    C = int(conv_ws[0].shape[2])
    n = len(conv_ws)
    max_k = max(Ks)
    n_c = n * C

    # ---------- hoisted weight-only prep (runs ONCE, not per call) ----------
    # Conv weights: flatten taps, zero-pad every width to max_k taps, concat
    # widths along the output-channel axis -> one (max_k*D, n*C) operand.
    w_blocks = [
        jnp.pad(w.reshape(K * D, C).astype(jnp.float32),
                ((0, (max_k - K) * D), (0, 0)))
        for K, w in zip(Ks, conv_ws)
    ]
    w_all = jnp.concatenate(w_blocks, axis=1).astype(compute_dtype)  # (maxK*D, n*C)
    bias_all = jnp.concatenate([b.reshape(1, C) for b in conv_bs],
                               axis=1).astype(jnp.float32)           # (1, n*C)
    fc_w_q = fc_w[:n_c].reshape(1, n_c).astype(jnp.float32)          # q half
    fc_w_a = fc_w[n_c:].reshape(1, n_c).astype(jnp.float32)          # a half
    fc_b2 = fc_b.reshape(1, 1).astype(jnp.float32)

    @jax.jit
    def forward(t_q, t_a):
        B, L, d = t_q.shape
        assert d == D and L >= max_k, (t_q.shape, Ks)
        l_outs = [L - K + 1 for K in Ks]
        t_pad = _round_up(max(l_outs), 8)       # sublane-aligned window count

        # Per-channel valid-window counts -> compile-time constant (1, n*C).
        limits = jnp.asarray(
            np.repeat(np.asarray(l_outs, np.int32), C)).reshape(1, n_c)

        # ---- activation-only per-call prep (fuses under jit) ----
        # Side-major stack: rows [q_0..q_{B-1}, a_0..a_{B-1}].
        x = jnp.concatenate([t_q, t_a], axis=0)                   # (2B, L, D)
        x = jnp.pad(x, ((0, 0), (0, t_pad + max_k - 1 - L), (0, 0)))
        # im2col: feature (k*D + d) of window t holds x[:, t+k, d].
        cols = jnp.concatenate([x[:, k:k + t_pad, :] for k in range(max_k)],
                               axis=-1)                           # (2B, T, maxK*D)
        x_flat = cols.reshape(2 * B * t_pad, max_k * D).astype(compute_dtype)

        vmem = pl.BlockSpec(memory_space=pltpu.MemorySpace.VMEM)
        return pl.pallas_call(
            _make_kernel(B, t_pad, n_c),
            out_shape=jax.ShapeDtypeStruct((B, 1), jnp.float32),
            in_specs=[vmem] * 7,
            out_specs=vmem,
        )(x_flat, w_all, bias_all, limits, fc_w_q, fc_w_a, fc_b2)

    return forward


def reference(t_q, t_a, conv_ws, conv_bs, fc_w, fc_b):
    # Plain-JAX reference with identical semantics (for validation only).
    def crm(x, w, b, K):
        L = x.shape[1]
        l_out = L - K + 1
        acc = sum(jnp.einsum('bld,dc->blc', x[:, k:k + l_out, :], w[k])
                  for k in range(K))
        acc = jnp.maximum(acc + b[None], 0.0)
        return jnp.max(acc, axis=1)                  # (B, C)

    n = len(KERNEL_SIZES)
    q = [crm(t_q, conv_ws[i], conv_bs[i], KERNEL_SIZES[i]) for i in range(n)]
    a = [crm(t_a, conv_ws[i], conv_bs[i], KERNEL_SIZES[i]) for i in range(n)]
    feats = jnp.concatenate(q + a, axis=1)
    return feats @ fc_w + fc_b


if __name__ == "__main__":
    n = len(KERNEL_SIZES)
    keys = jax.random.split(jax.random.PRNGKey(0), 2 + 2 * n + 2)

    t_q = jax.random.normal(keys[0], (BATCH, SEQ_LEN, MEM_DIM), jnp.float32)
    t_a = jax.random.normal(keys[1], (BATCH, SEQ_LEN, MEM_DIM), jnp.float32)
    conv_ws = [0.1 * jax.random.normal(keys[2 + i], (K, MEM_DIM, COV_DIM),
                                       jnp.float32)
               for i, K in enumerate(KERNEL_SIZES)]
    conv_bs = [0.1 * jax.random.normal(keys[2 + n + i], (1, COV_DIM),
                                       jnp.float32)
               for i in range(n)]
    fc_w = 0.1 * jax.random.normal(keys[2 + 2 * n], (2 * n * COV_DIM, 1),
                                   jnp.float32)
    fc_b = 0.1 * jax.random.normal(keys[3 + 2 * n], (1, 1), jnp.float32)

    ref = reference(t_q, t_a, conv_ws, conv_bs, fc_w, fc_b)

    # f32 path: exact semantics of the PyTorch module, strict tolerance.
    forward_f32 = make_conv_module(conv_ws, conv_bs, fc_w, fc_b)
    out = jax.block_until_ready(forward_f32(t_q, t_a))
    assert out.shape == (BATCH, 1), out.shape
    err_f32 = float(jnp.max(jnp.abs(out - ref)))

    # bf16 conv-bank operands (DMA-halving MXU path); mask/bias/max/ReLU/FC
    # stay f32, accumulation is f32 -> only input-rounding error remains.
    forward_bf16 = make_conv_module(conv_ws, conv_bs, fc_w, fc_b,
                                    compute_dtype=jnp.bfloat16)
    out_bf16 = jax.block_until_ready(forward_bf16(t_q, t_a))
    err_bf16 = float(jnp.max(jnp.abs(out_bf16 - ref)))

    if err_f32 < 1e-4 and err_bf16 < 5e-2:
        print("KERNEL_OK")
    else:
        raise AssertionError(
            f"mismatch vs reference: f32 err={err_f32}, bf16 err={err_bf16}")
</pallas_src>

<mosaic_0001>
module attributes {stable_mosaic.version = 11 : i64} {
  func.func @kernel(%arg0: memref<64x24xf32, #tpu.memory_space<vmem>>, %arg1: memref<24x32xf32, #tpu.memory_space<vmem>>, %arg2: memref<1x32xf32, #tpu.memory_space<vmem>>, %arg3: memref<1x32xi32, #tpu.memory_space<vmem>>, %arg4: memref<1x32xf32, #tpu.memory_space<vmem>>, %arg5: memref<1x32xf32, #tpu.memory_space<vmem>>, %arg6: memref<1x1xf32, #tpu.memory_space<vmem>>, %arg7: memref<2x1xf32, #tpu.memory_space<vmem>>) attributes {dimension_semantics = [], scalar_prefetch = 0 : i64, scratch_operands = 0 : i64, tpu.core_type = #tpu.core_type<tc>} {
    %c0 = arith.constant 0 : index
    %c0_0 = arith.constant 0 : index
    %0 = vector.load %arg0[%c0, %c0_0] : memref<64x24xf32, #tpu.memory_space<vmem>>, vector<64x24xf32>
    %c0_1 = arith.constant 0 : index
    %c0_2 = arith.constant 0 : index
    %1 = vector.load %arg1[%c0_1, %c0_2] : memref<24x32xf32, #tpu.memory_space<vmem>>, vector<24x32xf32>
    %cst = arith.constant dense<0.000000e+00> : vector<64x32xf32>
    %2 = tpu.matmul %0, %1, %cst {dimension_numbers = #tpu.dot_dimension_numbers<[1], [0], [0], [1], [0, 0, 1, 1], [], []>} : vector<64x24xf32>, vector<24x32xf32>, vector<64x32xf32> -> vector<64x32xf32>
    %3 = vector.shape_cast %2 : vector<64x32xf32> to vector<4x16x32xf32>
    %4 = tpu.iota {dimensions = array<i32: 0>} : vector<16x32xi32>
    %c0_3 = arith.constant 0 : index
    %c0_4 = arith.constant 0 : index
    %5 = vector.load %arg3[%c0_3, %c0_4] : memref<1x32xi32, #tpu.memory_space<vmem>>, vector<1x32xi32>
    %6 = vector.broadcast %5 : vector<1x32xi32> to vector<16x32xi32>
    %7 = arith.cmpi slt, %4, %6 : vector<16x32xi32>
    %cst_5 = arith.constant 0.000000e+00 : f32
    %cst_6 = arith.constant -1.000000e+30 : f32
    %8 = vector.broadcast %cst_5 : f32 to vector<16x32xf32>
    %9 = vector.broadcast %cst_6 : f32 to vector<16x32xf32>
    %10 = arith.select %7, %8, %9 : vector<16x32xi1>, vector<16x32xf32>
    %11 = vector.shape_cast %10 : vector<16x32xf32> to vector<1x16x32xf32>
    %12 = vector.broadcast %11 : vector<1x16x32xf32> to vector<4x16x32xf32>
    %13 = arith.addf %3, %12 : vector<4x16x32xf32>
    %cst_7 = arith.constant dense<0xFF800000> : vector<4x32xf32>
    %14 = vector.multi_reduction <maximumf>, %13, %cst_7 [1] : vector<4x16x32xf32> to vector<4x32xf32>
    %c0_8 = arith.constant 0 : index
    %c0_9 = arith.constant 0 : index
    %15 = vector.load %arg2[%c0_8, %c0_9] : memref<1x32xf32, #tpu.memory_space<vmem>>, vector<1x32xf32>
    %16 = vector.broadcast %15 : vector<1x32xf32> to vector<4x32xf32>
    %17 = arith.addf %14, %16 : vector<4x32xf32>
    %cst_10 = arith.constant 0.000000e+00 : f32
    %18 = vector.broadcast %cst_10 : f32 to vector<4x32xf32>
    %19 = arith.maximumf %17, %18 : vector<4x32xf32>
    %20 = vector.extract_strided_slice %19 {offsets = [0, 0], sizes = [2, 32], strides = [1, 1]} : vector<4x32xf32> to vector<2x32xf32>
    %21 = vector.extract_strided_slice %19 {offsets = [2, 0], sizes = [2, 32], strides = [1, 1]} : vector<4x32xf32> to vector<2x32xf32>
    %c0_11 = arith.constant 0 : index
    %c0_12 = arith.constant 0 : index
    %22 = vector.load %arg4[%c0_11, %c0_12] : memref<1x32xf32, #tpu.memory_space<vmem>>, vector<1x32xf32>
    %23 = vector.broadcast %22 : vector<1x32xf32> to vector<2x32xf32>
    %24 = arith.mulf %20, %23 : vector<2x32xf32>
    %c0_13 = arith.constant 0 : index
    %c0_14 = arith.constant 0 : index
    %25 = vector.load %arg5[%c0_13, %c0_14] : memref<1x32xf32, #tpu.memory_space<vmem>>, vector<1x32xf32>
    %26 = vector.broadcast %25 : vector<1x32xf32> to vector<2x32xf32>
    %27 = arith.mulf %21, %26 : vector<2x32xf32>
    %28 = arith.addf %24, %27 : vector<2x32xf32>
    %cst_15 = arith.constant dense<0.000000e+00> : vector<2xf32>
    %29 = vector.multi_reduction <add>, %28, %cst_15 [1] : vector<2x32xf32> to vector<2xf32>
    %30 = vector.shape_cast %29 : vector<2xf32> to vector<2x1xf32>
    %c0_16 = arith.constant 0 : index
    %c0_17 = arith.constant 0 : index
    %31 = vector.load %arg6[%c0_16, %c0_17] : memref<1x1xf32, #tpu.memory_space<vmem>>, vector<1x1xf32>
    %32 = vector.broadcast %31 : vector<1x1xf32> to vector<2x1xf32>
    %33 = arith.addf %30, %32 : vector<2x1xf32>
    %c0_18 = arith.constant 0 : index
    %c0_19 = arith.constant 0 : index
    %34 = vector.load %arg7[%c0_18, %c0_19] : memref<2x1xf32, #tpu.memory_space<vmem>>, vector<2x1xf32>
    tpu.vector_store %arg7[%c0_18, %c0_19], %33 {strides = array<i32>} : memref<2x1xf32, #tpu.memory_space<vmem>>, vector<2x1xf32>,
    return
  }
}

</mosaic_0001>

<bundles_post_ra>
// kernel: forward.1
= control target key start
LH: loop header
LB: loop body
LE: loop exit
PB: predicated region body
PF: predicated region fallthrough
CT: control target
= control target key end

     0   :  { %vm39_vm0 = vcmask 195584   ;;  %v169_v13 = vlaneseq  ;;  %v336_v17 = vmov -1e+30   ;;  %vm189_vm3 = vcmask 261120   ;;  %s444_s1 = inlined_call_operand.vmem [shape: f32[24,32], index: 1, kind: input, shape index: {}]   ;;  %s445_s0 = inlined_call_operand.vmem [shape: f32[64,24], index: 0, kind: input, shape index: {}]   ;;  %s446_s6 = inlined_call_operand.<no memory space> [shape: f32[1,1], index: 6, kind: input, shape index: {}]   ;;  %s447_s3 = inlined_call_operand.vmem [shape: s32[1,32], index: 3, kind: input, shape index: {}]   ;;  %s448_s2 = inlined_call_operand.vmem [shape: f32[1,32], index: 2, kind: input, shape index: {}]   ;;  %s449_s4 = inlined_call_operand.vmem [shape: f32[1,32], index: 4, kind: input, shape index: {}]   ;;  %s450_s5 = inlined_call_operand.vmem [shape: f32[1,32], index: 5, kind: input, shape index: {}]   ;;  %s451_s7 = inlined_call_operand.vmem [shape: f32[2,1], index: 7, kind: output, shape index: {}]  }
   0x1   :  { %v36_v0 = vld [vmem:[%s444_s1] sm:$0xff]  ;;  %v37_v1 = vld [vmem:[%s444_s1 + $0x8] sm:$0xff]  ;;  %v38_v5 = vld [vmem:[%s444_s1 + $0x10] sm:$0xff]  ;;  %v12_v12 = vstv %s446_s6  ;;  %vm264_vm4 = vcmask 1041409   ;;  %vm267_vm5 = vcmask 254976   ;;  %vm279_vm6 = vcmask 1024  }
   0x2   :  { %v327_v2 = vpack.c.bf16 %v37_v1, %v36_v0  ;;  %v28_v3 = vld [vmem:[%s445_s0] sm:$0xff]  ;;  %v29_v6 = vld [vmem:[%s445_s0 + $0x8] sm:$0xff]  ;;  %v30_v8 = vld [vmem:[%s445_s0 + $0x10] sm:$0xff]  ;;  %13 = vst [vmem:[#allocation2] sm:$0x1] %v12_v12  ;;  %v170_v14 = vshrl.u32 %v169_v13, 7 }
   0x3   :  { %v32_v4 = vld [vmem:[%s445_s0 + $0x20] sm:$0xff]  ;;  %315 = vmatprep.mubr.msk.f32.mxu0 %vm39_vm0, %v28_v3  ;;  %v33_v7 = vld [vmem:[%s445_s0 + $0x28] sm:$0xff]  ;;  %v34_v9 = vld [vmem:[%s445_s0 + $0x30] sm:$0xff] }
   0x4   :  { %321 = vmatprep.mubr.msk.f32.mxu1 %vm39_vm0, %v32_v4  ;;  %328 = vmatprep.subr.bf16.mxu0 %v327_v2  ;;  %v31_v10 = vld [vmem:[%s445_s0 + $0x18] sm:$0xff]  ;;  %v171_v15 = vadd.s32 8, %v170_v14  ;;  %v293_v16 = vld [vmem:[%s447_s3] ss:$0 sm:$0xff] }
   0x5   :  { %331 = vmatprep.subr.bf16.mxu1 %v327_v2  ;;  %330 = vmatpush3.bf16.msra.mxu0 %v327_v2  ;;  %v35_v11 = vld [vmem:[%s445_s0 + $0x38] sm:$0xff]  ;;  %vm177_vm2 = vcmp.lt.s32.totalorder %v170_v14, %v293_v16  ;;  %v294_v0 = vld [vmem:[%s448_s2] ss:$0 sm:$0xff] }
   0x6   :  { %333 = vmatpush3.bf16.msra.mxu1 %v327_v2  ;;  %313 = vmatprep.subr.mxu0 %v38_v5  ;;  %vm178_vm1 = vcmp.lt.s32.totalorder %v171_v15, %v293_v16  ;;  %v179_v19 = vsel %vm177_vm2, 0.0, %v336_v17 }
   0x7   :  { %332 = vmatprep.subr.mxu1 %v38_v5  ;;  %v180_v18 = vsel %vm178_vm1, 0.0, %v336_v17 }
   0x9   :  { %314 = vmatpush3.msra.mxu0 %v38_v5 }
   0xa   :  { %334 = vmatpush3.msra.mxu1 %v38_v5  ;;  %316 = vmatmul.mubr.msk.f32.vlgmr.msra.gmra.mrb[0].mxu0 %vm39_vm0, %v29_v6 }
   0xb   :  { %322 = vmatmul.mubr.msk.f32.vlgmr.msra.gmra.mrb[0].mxu1 %vm39_vm0, %v33_v7  ;;  %318 = vmatprep.mubr.msk.f32.mxu0 %vm39_vm0, %v30_v8 }
   0xc   :  { %324 = vmatprep.mubr.msk.f32.mxu1 %vm39_vm0, %v34_v9  ;;  %v295_v9 = vld [vmem:[%s449_s4] ss:$0 sm:$0xff] }
   0xe   :  { %319 = vmatmul.mubr.msk.f32.gmra.mrb[2].mxu0 %vm39_vm0, %v31_v10  ;;  %v296_v10 = vld [vmem:[%s450_s5] ss:$0 sm:$0xff] }
   0xf   :  { %325 = vmatmul.mubr.msk.f32.gmra.mrb[2].mxu1 %vm39_vm0, %v35_v11 }
  0xdd   :  { %v317_v20 = vpop.f32.mrb[0].mxu0 }
  0xde   :  { %v323_v21 = vpop.f32.mrb[0].mxu1  ;;  %v182_v22 = vadd.f32 %v317_v20, %v180_v18  ;;  %v130_v24 = vpop.f32.mrb[1].mxu0 }
  0xdf   :  { %v186_v23 = vadd.f32 %v323_v21, %v180_v18  ;;  %v150_v25 = vpop.f32.mrb[1].mxu1  ;;  %v181_v26 = vadd.f32 %v179_v19, %v130_v24 }
  0xe0   :  { %v185_v27 = vadd.f32 %v179_v19, %v150_v25  ;;  %v191_v28 = vsel %vm189_vm3, %v182_v22, -inf }
  0xe1   :  { %v209_v29 = vsel %vm189_vm3, %v186_v23, -inf  ;;  %v190_v30 = vsel %vm189_vm3, %v181_v26, -inf  ;;  %v320_v32 = vpop.f32.mrb[2].mxu0 }
  0xe2   :  { %v208_v31 = vsel %vm189_vm3, %v185_v27, -inf  ;;  %v326_v33 = vpop.f32.mrb[2].mxu1  ;;  %v192_v34 = vmax.f32 %v190_v30, %v191_v28  ;;  %v184_v36 = vadd.f32 %v320_v32, %v180_v18  ;;  %v140_v38 = vpop.f32.mrb[3].mxu0  ;;  %v297_v28 = vld [vmem:[#allocation2] ss:$0 sm:$0xff] }
  0xe3   :  { %v210_v35 = vmax.f32 %v208_v31, %v209_v29  ;;  %v188_v37 = vadd.f32 %v326_v33, %v180_v18  ;;  %v160_v39 = vpop.f32.mrb[3].mxu1  ;;  %v183_v40 = vadd.f32 %v179_v19, %v140_v38 }
  0xe4   :  { %v187_v41 = vadd.f32 %v179_v19, %v160_v39  ;;  %v193_v42 = vrot.slane %v192_v34, 4  ;;  %v200_v44 = vsel %vm189_vm3, %v184_v36, -inf }
  0xe5   :  { %v211_v43 = vrot.slane %v210_v35, 4  ;;  %v218_v45 = vsel %vm189_vm3, %v188_v37, -inf  ;;  %v199_v46 = vsel %vm189_vm3, %v183_v40, -inf }
  0xe6   :  { %v217_v47 = vsel %vm189_vm3, %v187_v41, -inf  ;;  %v194_v48 = vmax.f32 %v192_v34, %v193_v42  ;;  %v201_v50 = vmax.f32 %v199_v46, %v200_v44 }
  0xe7   :  { %v212_v49 = vmax.f32 %v210_v35, %v211_v43  ;;  %v219_v51 = vmax.f32 %v217_v47, %v218_v45 }
  0xe8   :  { %v195_v52 = vrot.slane %v194_v48, 2  ;;  %v202_v54 = vrot.slane %v201_v50, 4 }
  0xe9   :  { %v213_v53 = vrot.slane %v212_v49, 2  ;;  %v220_v55 = vrot.slane %v219_v51, 4 }
  0xea   :  { %v196_v56 = vmax.f32 %v194_v48, %v195_v52  ;;  %v203_v58 = vmax.f32 %v201_v50, %v202_v54 }
  0xeb   :  { %v214_v57 = vmax.f32 %v212_v49, %v213_v53  ;;  %v221_v59 = vmax.f32 %v219_v51, %v220_v55 }
  0xec   :  { %v197_v60 = vrot.slane %v196_v56, 1  ;;  %v204_v62 = vrot.slane %v203_v58, 2 }
  0xed   :  { %v215_v61 = vrot.slane %v214_v57, 1  ;;  %v222_v63 = vrot.slane %v221_v59, 2 }
  0xee   :  { %v198_v1 = vmax.f32 %v196_v56, %v197_v60  ;;  %v205_v3 = vmax.f32 %v203_v58, %v204_v62 }
  0xef   :  { %v216_v2 = vmax.f32 %v214_v57, %v215_v61  ;;  %v223_v4 = vmax.f32 %v221_v59, %v222_v63 }
  0xf0   :  { %v206_v5 = vrot.slane %v205_v3, 1  ;;  %v233_v7 = vadd.f32 %v294_v0, %v198_v1 }
  0xf1   :  { %v224_v6 = vrot.slane %v223_v4, 1  ;;  %v235_v8 = vadd.f32 %v294_v0, %v216_v2 }
  0xf2   :  { %v207_v11 = vmax.f32 %v205_v3, %v206_v5  ;;  %v237_v13 = vmax.f32 %v233_v7, 0.0 }
  0xf3   :  { %v225_v12 = vmax.f32 %v223_v4, %v224_v6  ;;  %v239_v14 = vmax.f32 %v235_v8, 0.0 }
  0xf4   :  { %v234_v15 = vadd.f32 %v294_v0, %v207_v11  ;;  %v248_v17 = vmul.f32 %v295_v9, %v237_v13 }
  0xf5   :  { %v236_v16 = vadd.f32 %v294_v0, %v225_v12  ;;  %v257_v18 = vmul.f32 %v296_v10, %v239_v14 }
  0xf6   :  { %v238_v19 = vmax.f32 %v234_v15, 0.0 }
  0xf7   :  { %v240_v20 = vmax.f32 %v236_v16, 0.0  ;;  %v259_v21 = vadd.f32 %v257_v18, %v248_v17 }
  0xf8   :  { %v249_v22 = vmul.f32 %v295_v9, %v238_v19 }
  0xf9   :  { %v258_v23 = vmul.f32 %v296_v10, %v240_v20 }
  0xfb   :  { %v260_v24 = vadd.f32 %v258_v23, %v249_v22 }
  0xfd   :  { %v263_v25 = vrot.slane %v260_v24, 7 }
  0xff   :  { %v265_v26 = vsel %vm264_vm4, %v263_v25, %v259_v21 }
 0x100   :  { %v268_v27 = vsel %vm267_vm5, %v265_v26, 0.0 }
 0x101   :  { %269 = vadd.xlane.f32.xlu0 %v268_v27 }
 0x18e   :  { %v270_v29 = vpop.xlane.xlu0 %269 }
 0x18f   :  { %v278_v30 = vadd.f32 %v297_v28, %v270_v29 }
 0x191   :  { %280 = vst.msk [vmem:[%s451_s7] sm:$0x3] %vm279_vm6, %v278_v30 }

</bundles_post_ra>
